<compile_context>
chip_gen: v6e
topology: v6e:2x2x1
jax: 0.10.0
libtpu: 0.0.40
codegen_flags: <defaults>
</compile_context>

<pallas_src>
import math
import functools

import jax
import jax.numpy as jnp
from jax import lax
from jax.experimental import pallas as pl
from jax.experimental.pallas import tpu as pltpu


def _angular_loss_kernel(cos_ref, targ_ref, out_ref, sumexp_acc, ct_acc, *,
                         loss_type, s, m, eps, n_total, c_total, tile_n, tile_c):
    i = pl.program_id(0)            # batch tile  ("parallel")
    j = pl.program_id(1)            # class tile  ("arbitrary", reduction)
    nj = pl.num_programs(1)

    @pl.when(j == 0)
    def _():
        sumexp_acc[...] = jnp.zeros_like(sumexp_acc)
        ct_acc[...] = jnp.zeros_like(ct_acc)

    # Upcast on load (bf16 inputs halve HBM traffic; compute stays f32).
    c = cos_ref[...].astype(jnp.float32)                     # (tile_n, tile_c)
    rows, cols = c.shape
    s_f = jnp.float32(s)
    # Static-bound shift replaces the per-tile max pass: |logit| <= s, so for
    # s <= 80 exp() cannot overflow f32 and no stabilization is needed at all.
    shift = jnp.float32(s) if s > 80.0 else None

    cls_ids = j * tile_c + lax.broadcasted_iota(jnp.int32, (rows, cols), 1)
    mask = cls_ids == targ_ref[...]                          # (tile_n, tile_c) bool

    # Target-class cosine lives in exactly one class tile; accumulate its column.
    ct_acc[...] += jnp.sum(jnp.where(mask, c, 0.0), axis=-1, keepdims=True)

    # Running sum of exp over NON-target classes (target added exactly at finalize,
    # so no catastrophic subtract later).  Non-target classes are intentionally
    # left unclipped (deviation <= s*1e-7 vs the reference).
    logits = c * s_f
    if shift is not None:
        logits = logits - shift
    ex = jnp.exp(logits)
    if c_total % tile_c != 0:
        # Ragged last class tile: also drop the padded (garbage) class columns.
        ex = jnp.where(jnp.logical_and(jnp.logical_not(mask), cls_ids < c_total),
                       ex, 0.0)
    else:
        ex = jnp.where(mask, 0.0, ex)
    sumexp_acc[...] += jnp.sum(ex, axis=-1, keepdims=True)

    @pl.when(j == nj - 1)
    def _():
        # Margin math once per row; clip only the (tile_n, 1) target column so the
        # sqrt argument stays in-domain.
        c_t = jnp.clip(ct_acc[...], -1.0 + eps, 1.0 - eps)   # (tile_n, 1)
        if loss_type == "arcface":
            cos_m = jnp.float32(math.cos(m))
            sin_m = jnp.float32(math.sin(m))
            tgt = c_t * cos_m - jnp.sqrt(1.0 - c_t * c_t) * sin_m
        elif loss_type == "cosface":
            tgt = c_t - jnp.float32(m)
        else:
            # TODO(synk): sphereface (cos(m * arccos(c)) over ALL classes) needs a
            # true arccos over the full tile; not lowered here.
            raise NotImplementedError(loss_type)
        tgt_logit = tgt * s_f                                 # (tile_n, 1)

        if shift is not None:
            lse = jnp.log(sumexp_acc[...] + jnp.exp(tgt_logit - shift)) + shift
        else:
            lse = jnp.log(sumexp_acc[...] + jnp.exp(tgt_logit))
        per_example = lse - tgt_logit                         # (tile_n, 1)

        if n_total % tile_n != 0:
            # Only the last batch tile actually has padded rows; this is a cheap
            # column-shaped compare+select that also kills any NaN/Inf from the
            # garbage padding before the reduce.
            row_ids = i * tile_n + lax.broadcasted_iota(jnp.int32, (rows, 1), 0)
            per_example = jnp.where(row_ids < n_total, per_example, 0.0)

        out_ref[0, 0] = jnp.sum(per_example)


def angular_loss(cosine, targ, *, loss_type="arcface", out_num=None, s=None, m=None,
                 tile_n=2048, tile_c=None):
    loss_type = loss_type.lower()
    assert loss_type in ("arcface", "sphereface", "cosface")
    # `is None` (not `not s`) so s=0 / m=0 are honored rather than replaced.
    if loss_type == "arcface":
        s = 30.0 if s is None else s
        m = 0.6 if m is None else m
    elif loss_type == "sphereface":
        s = 30.0 if s is None else s
        m = 0.35 if m is None else m
    else:  # cosface
        s = 64.0 if s is None else s
        m = 0.35 if m is None else m

    n, c_total = cosine.shape
    if out_num is not None:
        assert c_total == out_num
    targ2d = targ.astype(jnp.int32).reshape(n, 1)

    # ---- batch (sublane) tiling ----
    if n <= tile_n:
        tile_n = n                       # single full-height block (always legal)
    n_tiles = pl.cdiv(n, tile_n)

    # ---- class (lane) tiling ----
    itemsize = jnp.dtype(cosine.dtype).itemsize
    if tile_c is None:
        # Keep the whole class axis in one block while a block stays <= 8 MiB;
        # otherwise switch to 512-wide class tiles with online accumulation
        # (needed for realistic arcface class counts of 1e4-1e6).
        tile_c = c_total if tile_n * c_total * itemsize <= (8 << 20) else 512
    if tile_c >= c_total:
        tile_c = c_total                 # full lane extent (always legal)
    else:
        tile_c = max(128, (tile_c // 128) * 128)   # lane dim must be a multiple of 128
    c_tiles = pl.cdiv(c_total, tile_c)

    kernel = functools.partial(
        _angular_loss_kernel, loss_type=loss_type, s=float(s), m=float(m),
        eps=1e-7, n_total=n, c_total=c_total, tile_n=tile_n, tile_c=tile_c)

    # Explicit scoped-VMEM budget: 2x double-buffered cosine blocks + target blocks
    # + scratch + slack; floored at the 16 MiB v5e default, capped below v7x's
    # 64 MiB physical VMEM.
    cos_block_bytes = tile_n * tile_c * itemsize
    vmem_limit = int(min(max(2 * cos_block_bytes + 4 * tile_n * 4 + (4 << 20),
                             16 << 20),
                         60 << 20))

    partials = pl.pallas_call(
        kernel,
        out_shape=jax.ShapeDtypeStruct((n_tiles, 1), jnp.float32),
        grid_spec=pltpu.PrefetchScalarGridSpec(
            num_scalar_prefetch=0,
            grid=(n_tiles, c_tiles),
            in_specs=[
                pl.BlockSpec((tile_n, tile_c), lambda i, j: (i, j)),  # cosine tile
                pl.BlockSpec((tile_n, 1), lambda i, j: (i, 0)),       # target tile
            ],
            out_specs=pl.BlockSpec((1, 1), lambda i, j: (i, 0),
                                   memory_space=pltpu.SMEM),          # per-tile partial
            scratch_shapes=[pltpu.VMEM((tile_n, 1), jnp.float32),     # running sum(exp)
                            pltpu.VMEM((tile_n, 1), jnp.float32)],    # running target cos
        ),
        compiler_params=pltpu.CompilerParams(
            # Batch tiles are independent (megacore-shardable); class axis carries
            # the online-softmax accumulators and must stay serial.
            dimension_semantics=("parallel", "arbitrary"),
            vmem_limit_bytes=vmem_limit),
    )(cosine, targ2d)

    return jnp.sum(partials) / jnp.float32(n)


def _reference_loss(cosine, targ, *, loss_type, s, m):
    # Pure-JAX reference mirroring the PyTorch module.
    out_num = cosine.shape[1]
    c = jnp.clip(cosine.astype(jnp.float32), -1.0 + 1e-7, 1.0 - 1e-7)
    onehot = jax.nn.one_hot(targ, out_num, dtype=jnp.float32)
    if loss_type == "arcface":
        logits = jnp.cos(jnp.arccos(c) + onehot * m) * s
    elif loss_type == "cosface":
        logits = (c - onehot * m) * s
    else:
        raise NotImplementedError(loss_type)
    logp = jax.nn.log_softmax(logits, axis=-1)
    return -jnp.mean(jnp.take_along_axis(logp, targ[:, None], axis=1))


if __name__ == "__main__":
    key = jax.random.PRNGKey(0)
    k1, k2, k3, k4, k5, k6 = jax.random.split(key, 6)

    # Case 1: small batch, single block over both axes, arcface, C=500 (module
    # default out_num; exercises the "full lane extent" non-128-multiple path).
    N1, C1 = 8, 500
    cos1 = jax.random.uniform(k1, (N1, C1), jnp.float32, minval=-1.0, maxval=1.0)
    tgt1 = jax.random.randint(k2, (N1,), 0, C1, dtype=jnp.int32)
    loss1 = jax.block_until_ready(
        angular_loss(cos1, tgt1, loss_type="arcface", out_num=C1))
    ref1 = _reference_loss(cos1, tgt1, loss_type="arcface", s=30.0, m=0.6)
    assert jnp.allclose(loss1, ref1, atol=1e-4, rtol=1e-4), (loss1, ref1)

    # Case 2: multi batch-tile grid (parallel axis) with a ragged last batch tile,
    # cosface (s=64 exercises the max-free logsumexp path).
    N2, C2 = 40, 512
    cos2 = jax.random.uniform(k3, (N2, C2), jnp.float32, minval=-1.0, maxval=1.0)
    tgt2 = jax.random.randint(k4, (N2,), 0, C2, dtype=jnp.int32)
    loss2 = jax.block_until_ready(
        angular_loss(cos2, tgt2, loss_type="cosface", tile_n=16))
    ref2 = _reference_loss(cos2, tgt2, loss_type="cosface", s=64.0, m=0.35)
    assert jnp.allclose(loss2, ref2, atol=1e-4, rtol=1e-4), (loss2, ref2)

    # Case 3: bf16 input (half the HBM traffic) + class-axis tiling with online
    # accumulation and a ragged last class tile + ragged last batch tile, arcface.
    N3, C3 = 40, 640
    cos3 = jax.random.uniform(k5, (N3, C3), jnp.float32,
                              minval=-1.0, maxval=1.0).astype(jnp.bfloat16)
    tgt3 = jax.random.randint(k6, (N3,), 0, C3, dtype=jnp.int32)
    loss3 = jax.block_until_ready(
        angular_loss(cos3, tgt3, loss_type="arcface", tile_n=16, tile_c=256))
    ref3 = _reference_loss(cos3, tgt3, loss_type="arcface", s=30.0, m=0.6)
    assert jnp.allclose(loss3, ref3, atol=1e-3, rtol=1e-3), (loss3, ref3)

    print("KERNEL_OK")
</pallas_src>

<mosaic_0001>
module attributes {stable_mosaic.version = 11 : i64} {
  func.func @_angular_loss_kernel(%arg0: i32, %arg1: i32, %arg2: memref<8x500xf32, #tpu.memory_space<vmem>>, %arg3: memref<8x1xi32, #tpu.memory_space<vmem>>, %arg4: memref<1x1xf32, #tpu.memory_space<smem>>, %arg5: memref<8x1xf32, #tpu.memory_space<vmem>>, %arg6: memref<8x1xf32, #tpu.memory_space<vmem>>) attributes {dimension_semantics = [#tpu.dimension_semantics<parallel>, #tpu.dimension_semantics<arbitrary>], iteration_bounds = array<i64: 1, 1>, scalar_prefetch = 0 : i64, scratch_operands = 2 : i64, tpu.core_type = #tpu.core_type<tc>, window_params = [{transform_indices = @transform_0, window_bounds = array<i64: 8, 500>}, {transform_indices = @transform_1, window_bounds = array<i64: 8, 1>}, {transform_indices = @transform_2, window_bounds = array<i64: 1, 1>}]} {
    %c0_i32 = arith.constant 0 : i32
    %0 = arith.cmpi eq, %arg1, %c0_i32 : i32
    %1 = arith.extui %0 : i1 to i32
    %c0_i32_0 = arith.constant 0 : i32
    %2 = arith.cmpi ne, %1, %c0_i32_0 : i32
    scf.if %2 {
      %cst_19 = arith.constant 0.000000e+00 : f32
      %31 = vector.broadcast %cst_19 : f32 to vector<8x1xf32>
      %c0_20 = arith.constant 0 : index
      %c0_21 = arith.constant 0 : index
      %32 = vector.load %arg5[%c0_20, %c0_21] : memref<8x1xf32, #tpu.memory_space<vmem>>, vector<8x1xf32>
      tpu.vector_store %arg5[%c0_20, %c0_21], %31 {strides = array<i32>} : memref<8x1xf32, #tpu.memory_space<vmem>>, vector<8x1xf32>,
      %cst_22 = arith.constant 0.000000e+00 : f32
      %33 = vector.broadcast %cst_22 : f32 to vector<8x1xf32>
      %c0_23 = arith.constant 0 : index
      %c0_24 = arith.constant 0 : index
      %34 = vector.load %arg6[%c0_23, %c0_24] : memref<8x1xf32, #tpu.memory_space<vmem>>, vector<8x1xf32>
      tpu.vector_store %arg6[%c0_23, %c0_24], %33 {strides = array<i32>} : memref<8x1xf32, #tpu.memory_space<vmem>>, vector<8x1xf32>,
    } else {
    }
    %c0 = arith.constant 0 : index
    %c0_1 = arith.constant 0 : index
    %3 = vector.load %arg2[%c0, %c0_1] : memref<8x500xf32, #tpu.memory_space<vmem>>, vector<8x500xf32>
    %c500_i32 = arith.constant 500 : i32
    %4 = arith.muli %arg1, %c500_i32 : i32
    %5 = tpu.iota {dimensions = array<i32: 1>} : vector<8x500xi32>
    %6 = vector.broadcast %4 : i32 to vector<8x500xi32>
    %7 = arith.addi %6, %5 : vector<8x500xi32>
    %c0_2 = arith.constant 0 : index
    %c0_3 = arith.constant 0 : index
    %8 = vector.load %arg3[%c0_2, %c0_3] : memref<8x1xi32, #tpu.memory_space<vmem>>, vector<8x1xi32>
    %9 = vector.broadcast %8 : vector<8x1xi32> to vector<8x500xi32>
    %10 = arith.cmpi eq, %7, %9 : vector<8x500xi32>
    %c0_4 = arith.constant 0 : index
    %c0_5 = arith.constant 0 : index
    %11 = vector.load %arg6[%c0_4, %c0_5] : memref<8x1xf32, #tpu.memory_space<vmem>>, vector<8x1xf32>
    %cst = arith.constant 0.000000e+00 : f32
    %12 = vector.broadcast %cst : f32 to vector<8x500xf32>
    %13 = arith.select %10, %3, %12 : vector<8x500xi1>, vector<8x500xf32>
    %cst_6 = arith.constant dense<0.000000e+00> : vector<8xf32>
    %14 = vector.multi_reduction <add>, %13, %cst_6 [1] : vector<8x500xf32> to vector<8xf32>
    %15 = vector.shape_cast %14 : vector<8xf32> to vector<8x1xf32>
    %16 = arith.addf %11, %15 : vector<8x1xf32>
    %c0_7 = arith.constant 0 : index
    %c0_8 = arith.constant 0 : index
    %17 = vector.load %arg6[%c0_7, %c0_8] : memref<8x1xf32, #tpu.memory_space<vmem>>, vector<8x1xf32>
    tpu.vector_store %arg6[%c0_7, %c0_8], %16 {strides = array<i32>} : memref<8x1xf32, #tpu.memory_space<vmem>>, vector<8x1xf32>,
    %cst_9 = arith.constant 3.000000e+01 : f32
    %18 = vector.broadcast %cst_9 : f32 to vector<8x500xf32>
    %19 = arith.mulf %3, %18 : vector<8x500xf32>
    %20 = math.exp %19 : vector<8x500xf32>
    %cst_10 = arith.constant 0.000000e+00 : f32
    %21 = vector.broadcast %cst_10 : f32 to vector<8x500xf32>
    %22 = arith.select %10, %21, %20 : vector<8x500xi1>, vector<8x500xf32>
    %c0_11 = arith.constant 0 : index
    %c0_12 = arith.constant 0 : index
    %23 = vector.load %arg5[%c0_11, %c0_12] : memref<8x1xf32, #tpu.memory_space<vmem>>, vector<8x1xf32>
    %cst_13 = arith.constant dense<0.000000e+00> : vector<8xf32>
    %24 = vector.multi_reduction <add>, %22, %cst_13 [1] : vector<8x500xf32> to vector<8xf32>
    %25 = vector.shape_cast %24 : vector<8xf32> to vector<8x1xf32>
    %26 = arith.addf %23, %25 : vector<8x1xf32>
    %c0_14 = arith.constant 0 : index
    %c0_15 = arith.constant 0 : index
    %27 = vector.load %arg5[%c0_14, %c0_15] : memref<8x1xf32, #tpu.memory_space<vmem>>, vector<8x1xf32>
    tpu.vector_store %arg5[%c0_14, %c0_15], %26 {strides = array<i32>} : memref<8x1xf32, #tpu.memory_space<vmem>>, vector<8x1xf32>,
    %c0_i32_16 = arith.constant 0 : i32
    %28 = arith.cmpi eq, %arg1, %c0_i32_16 : i32
    %29 = arith.extui %28 : i1 to i32
    %cst_17 = arith.constant 3.000000e+01 : f32
    %c0_i32_18 = arith.constant 0 : i32
    %30 = arith.cmpi ne, %29, %c0_i32_18 : i32
    scf.if %30 {
      %c0_19 = arith.constant 0 : index
      %c0_20 = arith.constant 0 : index
      %31 = vector.load %arg6[%c0_19, %c0_20] : memref<8x1xf32, #tpu.memory_space<vmem>>, vector<8x1xf32>
      %cst_21 = arith.constant -0.99999988 : f32
      %cst_22 = arith.constant 0.99999988 : f32
      %32 = vector.broadcast %cst_21 : f32 to vector<8x1xf32>
      %33 = arith.maximumf %32, %31 : vector<8x1xf32>
      %34 = vector.broadcast %cst_22 : f32 to vector<8x1xf32>
      %35 = arith.minimumf %34, %33 : vector<8x1xf32>
      %cst_23 = arith.constant 0.825335621 : f32
      %36 = vector.broadcast %cst_23 : f32 to vector<8x1xf32>
      %37 = arith.mulf %35, %36 : vector<8x1xf32>
      %38 = arith.mulf %35, %35 : vector<8x1xf32>
      %cst_24 = arith.constant 1.000000e+00 : f32
      %39 = vector.broadcast %cst_24 : f32 to vector<8x1xf32>
      %40 = arith.subf %39, %38 : vector<8x1xf32>
      %41 = math.sqrt %40 : vector<8x1xf32>
      %cst_25 = arith.constant 0.564642489 : f32
      %42 = vector.broadcast %cst_25 : f32 to vector<8x1xf32>
      %43 = arith.mulf %41, %42 : vector<8x1xf32>
      %44 = arith.subf %37, %43 : vector<8x1xf32>
      %45 = vector.broadcast %cst_17 : f32 to vector<8x1xf32>
      %46 = arith.mulf %44, %45 : vector<8x1xf32>
      %c0_26 = arith.constant 0 : index
      %c0_27 = arith.constant 0 : index
      %47 = vector.load %arg5[%c0_26, %c0_27] : memref<8x1xf32, #tpu.memory_space<vmem>>, vector<8x1xf32>
      %48 = math.exp %46 : vector<8x1xf32>
      %49 = arith.addf %47, %48 : vector<8x1xf32>
      %50 = math.log %49 : vector<8x1xf32>
      %51 = arith.subf %50, %46 : vector<8x1xf32>
      %52 = vector.shape_cast %51 : vector<8x1xf32> to vector<1x8x1xf32>
      %cst_28 = arith.constant dense<0.000000e+00> : vector<1xf32>
      %53 = vector.multi_reduction <add>, %52, %cst_28 [1, 2] : vector<1x8x1xf32> to vector<1xf32>
      %54 = vector.shape_cast %53 : vector<1xf32> to vector<1x1x1xf32>
      %55 = vector.extract %54[0, 0, 0] : f32 from vector<1x1x1xf32>
      %c0_29 = arith.constant 0 : index
      %c0_30 = arith.constant 0 : index
      %56 = memref.load %arg4[%c0_29, %c0_30] : memref<1x1xf32, #tpu.memory_space<smem>>
      memref.store %55, %arg4[%c0_29, %c0_30] : memref<1x1xf32, #tpu.memory_space<smem>>
    } else {
    }
    return
  }
  func.func @transform_0(%arg0: i32, %arg1: i32) -> (i32, i32) {
    %c0_i32 = arith.constant 0 : i32
    return %arg0, %arg1 : i32, i32
  }
  func.func @transform_1(%arg0: i32, %arg1: i32) -> (i32, i32) {
    %c0_i32 = arith.constant 0 : i32
    %c0_i32_0 = arith.constant 0 : i32
    return %arg0, %c0_i32 : i32, i32
  }
  func.func @transform_2(%arg0: i32, %arg1: i32) -> (i32, i32) {
    %c0_i32 = arith.constant 0 : i32
    %c0_i32_0 = arith.constant 0 : i32
    return %arg0, %c0_i32 : i32, i32
  }
}

</mosaic_0001>

<bundles_post_ra>
// kernel: tpu_custom_call.1
= control target key start
LH: loop header
LB: loop body
LE: loop exit
PB: predicated region body
PF: predicated region fallthrough
CT: control target
= control target key end

     0   :  { %7 = vsyncpa [#allocation5], 0  ;;  %s233_s0 = inlined_call_operand.hbm [shape: f32[8,500], index: 0, kind: input, shape index: {}]   ;;  %s234_s1 = inlined_call_operand.vmem [shape: s32[8,1], index: 1, kind: input, shape index: {}]   ;;  %s235_s2 = inlined_call_operand.hbm [shape: f32[1,1], index: 2, kind: output, shape index: {}]  }
   0x1   :  { %8 = vsyncpa [#allocation6], 0  ;;  %s200_s9 = smov [#allocation4]  }
   0x2   :  { %s15_s10 = sshll.u32 %s200_s9, 4  ;;  %s16_s10 = int_to_ptr.vmem [resolvable:$true] %s15_s10 }
   0x3   :  { %s176_s11 = scalar_lea.vmem %s16_s10, 512  ;;  %p181_p1 = scmp.lt.s32.totalorder %s16_s10, %s16_s10 }
   0x4   :  { %p177_p0 = scmp.ne.s32.totalorder %s16_s10, %s176_s11  ;;  %p182_p2 = scmp.lt.s32.totalorder %s176_s11, %s176_s11 }
   0x6   :  { %p183_p3 = por %p182_p2, %p181_p1 }
   0x8   :  { %p184_p4 = pnand %p183_p3, %p177_p0 }
   0xa   :  { %187 = shalt.err (!%p184_p4)
}
   0xb   :  { %18 = dma.hbm_to_vmem [thread:$0]  %s233_s0, 512, %s16_s10, [#allocation5]  }
   0xc   :  { %196 = dma.done.wait [#allocation5], 512  }
   0xd   :  { %197 = vsyncadd [#allocation5], 4294966784  ;;  %v201_v0 = vmov 0   ;;  %v46_v1 = vld [vmem:[%s234_s1] sm:$0xff]  ;;  %vm28_vm0 = vcmask 7168   ;;  %v202_v2 = vmov 0.0   ;;  %v36_v15 = vlaneseq }
   0xe   :  { %153 = vset.pattern.permute.xlu0 %v201_v0  ;;  %29 = vst.msk [vmem:[#allocation2] sm:$0xff] %vm28_vm0, %v202_v2  ;;  %30 = vst.msk [vmem:[#allocation3] sm:$0xff] %vm28_vm0, %v202_v2  ;;  %v31_v3 = vld [vmem:[#allocation4] sm:$0xff]  ;;  %v32_v4 = vld [vmem:[#allocation4 + $0x8] sm:$0xff]  ;;  %vm61_vm5 = vcmask 949248   ;;  %s203_s1 = smov [#allocation7]  }
   0xf   :  { %48 = vperm.xlu0 %153, %v46_v1   ;;  %v34_v5 = vld [vmem:[#allocation4 + $0x18] sm:$0xff]  ;;  %v33_v6 = vld [vmem:[#allocation4 + $0x10] sm:$0xff]  ;;  %v69_v7 = vmul.f32 30.0, %v31_v3  ;;  %v70_v8 = vmul.f32 30.0, %v32_v4  ;;  %v37_v16 = vand.u32 127, %v36_v15 }
  0x10   :  { %v72_v9 = vmul.f32 30.0, %v34_v5  ;;  %v71_v10 = vmul.f32 30.0, %v33_v6 }
  0x11   :  { %v73_v11 = vmul.f32 1.442695, %v69_v7  ;;  %v75_v12 = vmul.f32 1.442695, %v70_v8  ;;  %v38_v17 = vadd.s32 128, %v37_v16  ;;  %v39_v18 = vadd.s32 256, %v37_v16 }
  0x12   :  { %v79_v13 = vmul.f32 1.442695, %v72_v9  ;;  %v77_v14 = vmul.f32 1.442695, %v71_v10  ;;  %v40_v19 = vadd.s32 384, %v37_v16 }
  0x13   :  { %154 = vpow2.f32 %v73_v11 }
  0x14   :  { %156 = vpow2.f32 %v75_v12 }
  0x15   :  { %158 = vpow2.f32 %v79_v13  ;;  %v85_v41 = vld [vmem:[#allocation2] sm:$0xff]  ;;  %v54_v42 = vld [vmem:[#allocation3] sm:$0xff] }
  0x16   :  { %160 = vpow2.f32 %v77_v14 }
  0x20   :  { %v155_v20 = vpop.eup %154 }
  0x21   :  { %v157_v21 = vpop.eup %156 }
  0x22   :  { %v159_v22 = vpop.eup %158 }
  0x23   :  { %v161_v24 = vpop.eup %160 }
  0x8a   :  { %v49_v23 = vpop.permute.xlu0 %48 }
  0x8b   :  { %vm50_vm1 = vcmp.eq.s32.totalorder %v37_v16, %v49_v23  ;;  %vm51_vm2 = vcmp.eq.s32.totalorder %v38_v17, %v49_v23  ;;  %vm52_vm3 = vcmp.eq.s32.totalorder %v39_v18, %v49_v23  ;;  %vm53_vm4 = vcmp.eq.s32.totalorder %v40_v19, %v49_v23 }
  0x8c   :  { %v81_v25 = vsel %vm50_vm1, 0.0, %v155_v20  ;;  %v82_v26 = vsel %vm51_vm2, 0.0, %v157_v21  ;;  %v84_v27 = vsel %vm53_vm4, 0.0, %v159_v22  ;;  %v55_v29 = vsel %vm50_vm1, %v31_v3, 0.0 }
  0x8d   :  { %v86_v28 = vadd.f32 %v82_v26, %v81_v25  ;;  %v56_v30 = vsel %vm51_vm2, %v32_v4, 0.0  ;;  %v83_v31 = vsel %vm52_vm3, 0.0, %v161_v24  ;;  %v58_v32 = vsel %vm53_vm4, %v34_v5, 0.0 }
  0x8e   :  { %v59_v33 = vadd.f32 %v56_v30, %v55_v29  ;;  %v57_v35 = vsel %vm52_vm3, %v33_v6, 0.0  ;;  %v88_v36 = vsel %vm61_vm5, %v84_v27, 0.0  ;;  %v62_v39 = vsel %vm61_vm5, %v58_v32, 0.0 }
  0x8f   :  { %v87_v34 = vadd.f32 %v86_v28, %v83_v31 }
  0x90   :  { %v60_v37 = vadd.f32 %v59_v33, %v57_v35 }
  0x91   :  { %v89_v38 = vadd.f32 %v88_v36, %v87_v34 }
  0x92   :  { %v63_v40 = vadd.f32 %v62_v39, %v60_v37 }
  0x93   :  { %90 = vadd.xlane.f32.xlu1 %v89_v38 }
  0x94   :  { %64 = vadd.xlane.f32.xlu0 %v63_v40 }
 0x11c   :  { %v91_v43 = vpop.xlane.xlu1 %90 }
 0x11d   :  { %v92_v44 = vadd.f32 %v91_v43, %v85_v41  ;;  %v65_v45 = vpop.xlane.xlu0 %64 }
 0x11e   :  { %v66_v46 = vadd.f32 %v65_v45, %v54_v42 }
 0x11f   :  { %93 = vst.msk [vmem:[#allocation2] sm:$0xff] %vm28_vm0, %v92_v44 }
 0x120   :  { %68 = vst.msk [vmem:[#allocation3] sm:$0xff] %vm28_vm0, %v66_v46 }
 0x126   :  { %v113_v62 = vld [vmem:[#allocation2] sm:$0xff] }
 0x127   :  { %v97_v47 = vld [vmem:[#allocation3] sm:$0xff] }
 0x128   :  { %v146_v48 = vclamps-f32 %v97_v47, 0.9999999 }
 0x12a   :  { %v101_v49 = vmul.f32 %v146_v48, %v146_v48  ;;  %v100_v56 = vmul.f32 0.8253356, %v146_v48 }
 0x12c   :  { %v102_v50 = vsub.f32 1.0, %v101_v49 }
 0x12e   :  { %162 = vrsqrt.f32 %v102_v50  ;;  %vm105_vm6 = vcmp.eq.f32.partialorder %v102_v50, inf  ;;  %v108_v53 = vand.u32 2147483648, %v102_v50  ;;  %vm107_vm7 = vcmp.eq.f32.partialorder %v102_v50, 0.0 }
 0x13b   :  { %v163_v51 = vpop.eup %162 }
 0x13c   :  { %v104_v52 = vmul.f32 %v163_v51, %v102_v50 }
 0x13e   :  { %v106_v54 = vsel %vm105_vm6, %v102_v50, %v104_v52 }
 0x13f   :  { %v109_v55 = vsel %vm107_vm7, %v108_v53, %v106_v54 }
 0x140   :  { %v110_v57 = vmul.f32 0.5646425, %v109_v55 }
 0x142   :  { %v111_v58 = vsub.f32 %v100_v56, %v110_v57 }
 0x144   :  { %v112_v59 = vmul.f32 30.0, %v111_v58 }
 0x146   :  { %v114_v60 = vmul.f32 1.442695, %v112_v59 }
 0x148   :  { %164 = vpow2.f32 %v114_v60 }
 0x155   :  { %v165_v61 = vpop.eup %164 }
 0x156   :  { %v116_v63 = vadd.f32 %v165_v61, %v113_v62 }
 0x158   :  { %166 = vlog2.f32 %v116_v63 }
 0x165   :  { %v167_v0 = vpop.eup %166 }
 0x166   :  { %v118_v1 = vmul.f32 0.6931472, %v167_v0 }
 0x168   :  { %v119_v2 = vsub.f32 %v118_v1, %v112_v59 }
 0x16a   :  { %v120_v3 = vsel %vm28_vm0, %v119_v2, 0.0 }
 0x16b   :  { %121 = vadd.xlane.f32.xlu1 %v120_v3 }
 0x1f4   :  { %v122_v4 = vpop.xlane.xlu1 %121 }
 0x1f5   :  { %v123_v5 = vrot.slane %v122_v4, 4 }
 0x1f7   :  { %v124_v6 = vadd.f32 %v123_v5, %v122_v4 }
 0x1f9   :  { %v125_v7 = vrot.slane %v124_v6, 2 }
 0x1fb   :  { %v126_v8 = vadd.f32 %v125_v7, %v124_v6 }
 0x1fd   :  { %v127_v9 = vrot.slane %v126_v8, 1 }
 0x1ff   :  { %v128_v10 = vadd.f32 %v127_v9, %v126_v8 }
 0x201   :  { %147 = vpush %v128_v10 }
 0x232   :  { %s148_s0 = spop %147 }
 0x233   :  { %131 = sst [smem:[#allocation7]] %s148_s0 }
 0x234   :  { %139 = dma.smem_to_hbm %s203_s1, 16, %s235_s2, [#allocation6]  }
 0x235   :  { %198 = dma.done.wait [#allocation6], 16  }
 0x236   :  { %199 = vsyncadd [#allocation6], 4294967280 }
 0x237   :  { %143 = sfence }
 0x238   :  { %144 = vsyncpa [#allocation5], 1 }
 0x239   :  { %145 = vsyncpa [#allocation6], 1 }

</bundles_post_ra>
